<compile_context>
chip_gen: v7x
topology: tpu7x:2x2x1
jax: 0.10.0
libtpu: 0.0.40
codegen_flags: <defaults>
</compile_context>

<pallas_src>
import functools

import jax
import jax.numpy as jnp
from jax.experimental import pallas as pl
from jax.experimental.pallas import tpu as pltpu

EPS = 1e-5
K = 3  # kernel_size implied by padding=1 + residual add (spatial preserved)


def _residual_block_kernel(
    x_ref,       # (N, HP, P)      input slab, P = 2*W*C, lane = (h%2)*W*C + w*C + c
    wb_ref,      # (2, 3*P, P)     fused block-banded conv weights (conv1, conv2)
    prm_ref,     # (8, P)          rows: b1, g1, bt1, b2, g2, bt2, 0, 0 (channel-tiled)
    pool_ref,    # (P, P)          channel-pool matrix: 1 where lane channels match
    out_ref,     # (N, HP, P)
    *, inv_cnt,  # 1 / (N*H*W), python float (static)
):
    N, HP, P = x_ref.shape
    M = N * HP

    x3d = x_ref[...]
    pool = pool_ref[...]
    prm = prm_ref[...]
    bias1, g1, bt1 = prm[0:1], prm[1:2], prm[2:3]
    bias2, g2, bt2 = prm[3:4], prm[4:5], prm[5:6]

    zpair = jnp.zeros((N, 1, P), jnp.float32)

    def conv3x3(h3d, w2d, bias):
        # Shifted pair-row views; the zero pair realizes the H padding=1.
        h_up = jnp.concatenate([zpair, h3d[:, :HP - 1, :]], axis=1)
        h_dn = jnp.concatenate([h3d[:, 1:, :], zpair], axis=1)
        xcat = jnp.concatenate([h_up, h3d, h_dn], axis=2).reshape(M, 3 * P)
        y = jnp.dot(xcat, w2d, preferred_element_type=jnp.float32)
        return y + bias                      # (1, P) broadcast

    def batchnorm(y2d, g, bt):
        # One-pass train-mode stats; channel collapse + broadcast via one matmul.
        s1 = jnp.sum(y2d, axis=0, keepdims=True)          # (1, P)
        s2 = jnp.sum(y2d * y2d, axis=0, keepdims=True)    # (1, P)
        stats = jnp.dot(jnp.concatenate([s1, s2], axis=0), pool,
                        preferred_element_type=jnp.float32)  # (2, P)
        mean = stats[0:1] * inv_cnt
        var = stats[1:2] * inv_cnt - mean * mean           # biased (train) var
        scale = jax.lax.rsqrt(var + EPS) * g
        return (y2d - mean) * scale + bt

    # --- conv1 -> bn1 -> relu ---
    h = conv3x3(x3d, wb_ref[0], bias1)
    h = jnp.maximum(batchnorm(h, g1, bt1), 0.0)

    # --- conv2 -> residual add -> bn2 -> relu ---
    y = conv3x3(h.reshape(N, HP, P), wb_ref[1], bias2)
    y = x3d.reshape(M, P) + y
    y = jnp.maximum(batchnorm(y, g2, bt2), 0.0)

    out_ref[...] = y.reshape(N, HP, P).astype(out_ref.dtype)


def residual_block_pallas(x_nchw, params):
    """x_nchw: (N, C, H, W) float32.  Returns (N, C, H, W)."""
    w1, b1, g1, bt1, w2, b2, g2, bt2 = params
    N, C, H, W = x_nchw.shape
    assert H % 2 == 0, "H must be even for row-pair lane packing"
    # TODO(synk): pad a zero row for odd H (and drop it after) if ever needed.
    WC = W * C
    P = 2 * WC               # fused lane width (128 at the test shape)
    HP = H // 2
    M = N * HP

    # NCHW -> paired slab (N, H/2, 2*W*C); lane = (h%2)*W*C + w*C + c.
    x_slab = (jnp.transpose(x_nchw, (0, 2, 3, 1))          # (N, H, W, C)
              .reshape(N, H, WC)
              .reshape(N, HP, P))                          # contiguous -> free

    # Per-kh banded matrix: Bkh[w_in*C+ci, w_out*C+co] = w[co,ci,kh,kw] with
    # kw = w_in - w_out + 1, zero outside the band (implicit W padding).
    def band_kh(w_oihw, kh):
        shifts = (jnp.eye(W, k=1, dtype=jnp.float32),      # kw=0 : w_in = w_out-1
                  jnp.eye(W, k=0, dtype=jnp.float32),      # kw=1 : w_in = w_out
                  jnp.eye(W, k=-1, dtype=jnp.float32))     # kw=2 : w_in = w_out+1
        return sum(jnp.kron(shifts[kw], w_oihw[:, :, kh, kw].T) for kw in range(K))

    # Fused block-banded weight (3*P, P): output pair p reads input pairs
    # p-1 (rows 0:P), p (rows P:2P), p+1 (rows 2P:3P); block (s_in, s_out)
    # within a pair carries the kernel row kh = 2*dp + s_in - s_out + 1.
    def block_band(w_oihw):
        B = [band_kh(w_oihw, kh).astype(jnp.float32) for kh in range(K)]
        Z = jnp.zeros((WC, WC), jnp.float32)
        w_m1 = jnp.block([[Z,    Z   ],
                          [B[0], Z   ]])                   # dp = -1
        w_0 = jnp.block([[B[1], B[0]],
                         [B[2], B[1]]])                    # dp =  0
        w_p1 = jnp.block([[Z,    B[2]],
                          [Z,    Z   ]])                   # dp = +1
        return jnp.concatenate([w_m1, w_0, w_p1], axis=0)  # (3*P, P)

    wb = jnp.stack([block_band(w1), block_band(w2)])       # (2, 3*P, P)

    def tile_c(v):  # per-channel (C,) -> (1, P) matching lane = (..)*C + c
        return jnp.tile(v.reshape(1, C), (1, 2 * W)).astype(jnp.float32)

    prm = jnp.concatenate(
        [tile_c(b1), tile_c(g1), tile_c(bt1),
         tile_c(b2), tile_c(g2), tile_c(bt2),
         jnp.zeros((2, P), jnp.float32)], axis=0)          # (8, P)

    # Channel-pool matrix: pool[i, j] = 1 iff lane i and lane j share a channel.
    pool = jnp.kron(jnp.ones((2 * W, 2 * W), jnp.float32),
                    jnp.eye(C, dtype=jnp.float32))         # (P, P)

    kernel = functools.partial(_residual_block_kernel,
                               inv_cnt=1.0 / float(N * H * W))

    vmem_spec = pl.BlockSpec(memory_space=pltpu.MemorySpace.VMEM)
    out_slab = pl.pallas_call(
        kernel,
        out_shape=jax.ShapeDtypeStruct((N, HP, P), jnp.float32),
        in_specs=[vmem_spec] * 4,
        out_specs=vmem_spec,
        compiler_params=pltpu.CompilerParams(
            vmem_limit_bytes=4 * 1024 * 1024),
    )(x_slab, wb, prm, pool)

    # slab -> NCHW
    out_nhwc = out_slab.reshape(N, HP, 2, W, C).reshape(N, H, W, C)
    return jnp.transpose(out_nhwc, (0, 3, 1, 2))


def residual_block_ref(x, params):
    """Pure-JAX NCHW reference mirroring the PyTorch forward (train-mode BN)."""
    w1, b1, g1, bt1, w2, b2, g2, bt2 = params

    def conv(x, w, b):
        y = jax.lax.conv_general_dilated(
            x, w, window_strides=(1, 1), padding=((1, 1), (1, 1)),
            dimension_numbers=("NCHW", "OIHW", "NCHW"))
        return y + b[None, :, None, None]

    def bn(x, g, bt):
        m = jnp.mean(x, axis=(0, 2, 3), keepdims=True)
        v = jnp.mean((x - m) ** 2, axis=(0, 2, 3), keepdims=True)
        return (x - m) * jax.lax.rsqrt(v + EPS) * g[None, :, None, None] \
            + bt[None, :, None, None]

    y = jax.nn.relu(bn(conv(x, w1, b1), g1, bt1))
    y = x + conv(y, w2, b2)
    return jax.nn.relu(bn(y, g2, bt2))


if __name__ == "__main__":
    N, C, H, W = 2, 4, 16, 16  # batch=2, hidden_size=4, spatial=16

    key = jax.random.PRNGKey(0)
    kx, kw1, kb1, kw2, kb2 = jax.random.split(key, 5)

    x = jax.random.normal(kx, (N, C, H, W), jnp.float32)

    # deterministic parameter init (shapes from the module's __init__)
    w1 = jax.random.normal(kw1, (C, C, K, K), jnp.float32) * 0.1
    b1 = jax.random.normal(kb1, (C,), jnp.float32) * 0.1
    w2 = jax.random.normal(kw2, (C, C, K, K), jnp.float32) * 0.1
    b2 = jax.random.normal(kb2, (C,), jnp.float32) * 0.1
    g1 = jnp.ones((C,), jnp.float32)    # BatchNorm2d default weight
    bt1 = jnp.zeros((C,), jnp.float32)  # BatchNorm2d default bias
    g2 = jnp.ones((C,), jnp.float32)
    bt2 = jnp.zeros((C,), jnp.float32)

    params = (w1, b1, g1, bt1, w2, b2, g2, bt2)

    out = residual_block_pallas(x, params)
    out = jax.block_until_ready(out)

    ref = residual_block_ref(x, params)
    assert out.shape == (N, C, H, W)
    assert jnp.allclose(out, ref, atol=1e-4, rtol=1e-4), \
        f"max err {jnp.max(jnp.abs(out - ref))}"

    print("KERNEL_OK")
</pallas_src>

<mosaic_0001>
module attributes {stable_mosaic.version = 11 : i64} {
  func.func @_residual_block_kernel(%arg0: memref<2x8x128xf32, #tpu.memory_space<vmem>>, %arg1: memref<2x384x128xf32, #tpu.memory_space<vmem>>, %arg2: memref<8x128xf32, #tpu.memory_space<vmem>>, %arg3: memref<128x128xf32, #tpu.memory_space<vmem>>, %arg4: memref<2x8x128xf32, #tpu.memory_space<vmem>>) attributes {dimension_semantics = [], scalar_prefetch = 0 : i64, scratch_operands = 0 : i64, tpu.core_type = #tpu.core_type<tc>} {
    %c0 = arith.constant 0 : index
    %c0_0 = arith.constant 0 : index
    %c0_1 = arith.constant 0 : index
    %0 = vector.load %arg0[%c0, %c0_0, %c0_1] : memref<2x8x128xf32, #tpu.memory_space<vmem>>, vector<2x8x128xf32>
    %c0_2 = arith.constant 0 : index
    %c0_3 = arith.constant 0 : index
    %1 = vector.load %arg3[%c0_2, %c0_3] : memref<128x128xf32, #tpu.memory_space<vmem>>, vector<128x128xf32>
    %c0_4 = arith.constant 0 : index
    %c0_5 = arith.constant 0 : index
    %2 = vector.load %arg2[%c0_4, %c0_5] : memref<8x128xf32, #tpu.memory_space<vmem>>, vector<8x128xf32>
    %3 = vector.extract_strided_slice %2 {offsets = [0, 0], sizes = [1, 128], strides = [1, 1]} : vector<8x128xf32> to vector<1x128xf32>
    %4 = vector.extract_strided_slice %2 {offsets = [1, 0], sizes = [1, 128], strides = [1, 1]} : vector<8x128xf32> to vector<1x128xf32>
    %5 = vector.extract_strided_slice %2 {offsets = [2, 0], sizes = [1, 128], strides = [1, 1]} : vector<8x128xf32> to vector<1x128xf32>
    %6 = vector.extract_strided_slice %2 {offsets = [3, 0], sizes = [1, 128], strides = [1, 1]} : vector<8x128xf32> to vector<1x128xf32>
    %7 = vector.extract_strided_slice %2 {offsets = [4, 0], sizes = [1, 128], strides = [1, 1]} : vector<8x128xf32> to vector<1x128xf32>
    %8 = vector.extract_strided_slice %2 {offsets = [5, 0], sizes = [1, 128], strides = [1, 1]} : vector<8x128xf32> to vector<1x128xf32>
    %cst = arith.constant 0.000000e+00 : f32
    %9 = vector.broadcast %cst : f32 to vector<2x1x128xf32>
    %c0_6 = arith.constant 0 : index
    %c0_7 = arith.constant 0 : index
    %c0_8 = arith.constant 0 : index
    %10 = vector.load %arg1[%c0_6, %c0_7, %c0_8] : memref<2x384x128xf32, #tpu.memory_space<vmem>>, vector<1x384x128xf32>
    %11 = vector.shape_cast %10 : vector<1x384x128xf32> to vector<384x128xf32>
    %12 = vector.extract_strided_slice %0 {offsets = [0, 0, 0], sizes = [2, 7, 128], strides = [1, 1, 1]} : vector<2x8x128xf32> to vector<2x7x128xf32>
    %13 = tpu.concatenate %9, %12 in 1 : vector<2x1x128xf32>, vector<2x7x128xf32> -> vector<2x8x128xf32>
    %14 = vector.extract_strided_slice %0 {offsets = [0, 1, 0], sizes = [2, 7, 128], strides = [1, 1, 1]} : vector<2x8x128xf32> to vector<2x7x128xf32>
    %15 = tpu.concatenate %14, %9 in 1 : vector<2x7x128xf32>, vector<2x1x128xf32> -> vector<2x8x128xf32>
    %16 = tpu.concatenate %13, %0, %15 in 2 : vector<2x8x128xf32>, vector<2x8x128xf32>, vector<2x8x128xf32> -> vector<2x8x384xf32>
    %17 = vector.shape_cast %16 : vector<2x8x384xf32> to vector<16x384xf32>
    %cst_9 = arith.constant dense<0.000000e+00> : vector<16x128xf32>
    %18 = tpu.matmul %17, %11, %cst_9 {dimension_numbers = #tpu.dot_dimension_numbers<[1], [0], [0], [1], [0, 0, 1, 1], [], []>} : vector<16x384xf32>, vector<384x128xf32>, vector<16x128xf32> -> vector<16x128xf32>
    %19 = vector.broadcast %3 : vector<1x128xf32> to vector<16x128xf32>
    %20 = arith.addf %18, %19 : vector<16x128xf32>
    %cst_10 = arith.constant dense<0.000000e+00> : vector<128xf32>
    %21 = vector.multi_reduction <add>, %20, %cst_10 [0] : vector<16x128xf32> to vector<128xf32>
    %22 = vector.shape_cast %21 : vector<128xf32> to vector<1x128xf32>
    %23 = arith.mulf %20, %20 : vector<16x128xf32>
    %cst_11 = arith.constant dense<0.000000e+00> : vector<128xf32>
    %24 = vector.multi_reduction <add>, %23, %cst_11 [0] : vector<16x128xf32> to vector<128xf32>
    %25 = vector.shape_cast %24 : vector<128xf32> to vector<1x128xf32>
    %26 = tpu.concatenate %22, %25 in 0 : vector<1x128xf32>, vector<1x128xf32> -> vector<2x128xf32>
    %cst_12 = arith.constant dense<0.000000e+00> : vector<2x128xf32>
    %27 = tpu.matmul %26, %1, %cst_12 {dimension_numbers = #tpu.dot_dimension_numbers<[1], [0], [0], [1], [0, 0, 1, 1], [], []>} : vector<2x128xf32>, vector<128x128xf32>, vector<2x128xf32> -> vector<2x128xf32>
    %28 = vector.extract_strided_slice %27 {offsets = [0, 0], sizes = [1, 128], strides = [1, 1]} : vector<2x128xf32> to vector<1x128xf32>
    %cst_13 = arith.constant 0.001953125 : f32
    %29 = vector.broadcast %cst_13 : f32 to vector<1x128xf32>
    %30 = arith.mulf %28, %29 : vector<1x128xf32>
    %31 = vector.extract_strided_slice %27 {offsets = [1, 0], sizes = [1, 128], strides = [1, 1]} : vector<2x128xf32> to vector<1x128xf32>
    %cst_14 = arith.constant 0.001953125 : f32
    %32 = vector.broadcast %cst_14 : f32 to vector<1x128xf32>
    %33 = arith.mulf %31, %32 : vector<1x128xf32>
    %34 = arith.mulf %30, %30 : vector<1x128xf32>
    %35 = arith.subf %33, %34 : vector<1x128xf32>
    %cst_15 = arith.constant 9.99999974E-6 : f32
    %36 = vector.broadcast %cst_15 : f32 to vector<1x128xf32>
    %37 = arith.addf %35, %36 : vector<1x128xf32>
    %38 = math.rsqrt %37 : vector<1x128xf32>
    %39 = arith.mulf %38, %4 : vector<1x128xf32>
    %40 = vector.broadcast %30 : vector<1x128xf32> to vector<16x128xf32>
    %41 = arith.subf %20, %40 : vector<16x128xf32>
    %42 = vector.broadcast %39 : vector<1x128xf32> to vector<16x128xf32>
    %43 = arith.mulf %41, %42 : vector<16x128xf32>
    %44 = vector.broadcast %5 : vector<1x128xf32> to vector<16x128xf32>
    %45 = arith.addf %43, %44 : vector<16x128xf32>
    %cst_16 = arith.constant 0.000000e+00 : f32
    %46 = vector.broadcast %cst_16 : f32 to vector<16x128xf32>
    %47 = arith.maximumf %45, %46 : vector<16x128xf32>
    %48 = vector.shape_cast %47 : vector<16x128xf32> to vector<2x8x128xf32>
    %c1 = arith.constant 1 : index
    %c0_17 = arith.constant 0 : index
    %c0_18 = arith.constant 0 : index
    %49 = vector.load %arg1[%c1, %c0_17, %c0_18] : memref<2x384x128xf32, #tpu.memory_space<vmem>>, vector<1x384x128xf32>
    %50 = vector.shape_cast %49 : vector<1x384x128xf32> to vector<384x128xf32>
    %51 = vector.extract_strided_slice %48 {offsets = [0, 0, 0], sizes = [2, 7, 128], strides = [1, 1, 1]} : vector<2x8x128xf32> to vector<2x7x128xf32>
    %52 = tpu.concatenate %9, %51 in 1 : vector<2x1x128xf32>, vector<2x7x128xf32> -> vector<2x8x128xf32>
    %53 = vector.extract_strided_slice %48 {offsets = [0, 1, 0], sizes = [2, 7, 128], strides = [1, 1, 1]} : vector<2x8x128xf32> to vector<2x7x128xf32>
    %54 = tpu.concatenate %53, %9 in 1 : vector<2x7x128xf32>, vector<2x1x128xf32> -> vector<2x8x128xf32>
    %55 = tpu.concatenate %52, %48, %54 in 2 : vector<2x8x128xf32>, vector<2x8x128xf32>, vector<2x8x128xf32> -> vector<2x8x384xf32>
    %56 = vector.shape_cast %55 : vector<2x8x384xf32> to vector<16x384xf32>
    %cst_19 = arith.constant dense<0.000000e+00> : vector<16x128xf32>
    %57 = tpu.matmul %56, %50, %cst_19 {dimension_numbers = #tpu.dot_dimension_numbers<[1], [0], [0], [1], [0, 0, 1, 1], [], []>} : vector<16x384xf32>, vector<384x128xf32>, vector<16x128xf32> -> vector<16x128xf32>
    %58 = vector.broadcast %6 : vector<1x128xf32> to vector<16x128xf32>
    %59 = arith.addf %57, %58 : vector<16x128xf32>
    %60 = vector.shape_cast %0 : vector<2x8x128xf32> to vector<16x128xf32>
    %61 = arith.addf %60, %59 : vector<16x128xf32>
    %cst_20 = arith.constant dense<0.000000e+00> : vector<128xf32>
    %62 = vector.multi_reduction <add>, %61, %cst_20 [0] : vector<16x128xf32> to vector<128xf32>
    %63 = vector.shape_cast %62 : vector<128xf32> to vector<1x128xf32>
    %64 = arith.mulf %61, %61 : vector<16x128xf32>
    %cst_21 = arith.constant dense<0.000000e+00> : vector<128xf32>
    %65 = vector.multi_reduction <add>, %64, %cst_21 [0] : vector<16x128xf32> to vector<128xf32>
    %66 = vector.shape_cast %65 : vector<128xf32> to vector<1x128xf32>
    %67 = tpu.concatenate %63, %66 in 0 : vector<1x128xf32>, vector<1x128xf32> -> vector<2x128xf32>
    %cst_22 = arith.constant dense<0.000000e+00> : vector<2x128xf32>
    %68 = tpu.matmul %67, %1, %cst_22 {dimension_numbers = #tpu.dot_dimension_numbers<[1], [0], [0], [1], [0, 0, 1, 1], [], []>} : vector<2x128xf32>, vector<128x128xf32>, vector<2x128xf32> -> vector<2x128xf32>
    %69 = vector.extract_strided_slice %68 {offsets = [0, 0], sizes = [1, 128], strides = [1, 1]} : vector<2x128xf32> to vector<1x128xf32>
    %cst_23 = arith.constant 0.001953125 : f32
    %70 = vector.broadcast %cst_23 : f32 to vector<1x128xf32>
    %71 = arith.mulf %69, %70 : vector<1x128xf32>
    %72 = vector.extract_strided_slice %68 {offsets = [1, 0], sizes = [1, 128], strides = [1, 1]} : vector<2x128xf32> to vector<1x128xf32>
    %cst_24 = arith.constant 0.001953125 : f32
    %73 = vector.broadcast %cst_24 : f32 to vector<1x128xf32>
    %74 = arith.mulf %72, %73 : vector<1x128xf32>
    %75 = arith.mulf %71, %71 : vector<1x128xf32>
    %76 = arith.subf %74, %75 : vector<1x128xf32>
    %cst_25 = arith.constant 9.99999974E-6 : f32
    %77 = vector.broadcast %cst_25 : f32 to vector<1x128xf32>
    %78 = arith.addf %76, %77 : vector<1x128xf32>
    %79 = math.rsqrt %78 : vector<1x128xf32>
    %80 = arith.mulf %79, %7 : vector<1x128xf32>
    %81 = vector.broadcast %71 : vector<1x128xf32> to vector<16x128xf32>
    %82 = arith.subf %61, %81 : vector<16x128xf32>
    %83 = vector.broadcast %80 : vector<1x128xf32> to vector<16x128xf32>
    %84 = arith.mulf %82, %83 : vector<16x128xf32>
    %85 = vector.broadcast %8 : vector<1x128xf32> to vector<16x128xf32>
    %86 = arith.addf %84, %85 : vector<16x128xf32>
    %cst_26 = arith.constant 0.000000e+00 : f32
    %87 = vector.broadcast %cst_26 : f32 to vector<16x128xf32>
    %88 = arith.maximumf %86, %87 : vector<16x128xf32>
    %89 = vector.shape_cast %88 : vector<16x128xf32> to vector<2x8x128xf32>
    %c0_27 = arith.constant 0 : index
    %c0_28 = arith.constant 0 : index
    %c0_29 = arith.constant 0 : index
    %90 = vector.load %arg4[%c0_27, %c0_28, %c0_29] : memref<2x8x128xf32, #tpu.memory_space<vmem>>, vector<2x8x128xf32>
    tpu.vector_store %arg4[%c0_27, %c0_28, %c0_29], %89 {strides = array<i32>} : memref<2x8x128xf32, #tpu.memory_space<vmem>>, vector<2x8x128xf32>,
    return
  }
}

</mosaic_0001>

<bundles_post_ra>
// kernel: tpu_custom_call.1
= control target key start
LH: loop header
LB: loop body
LE: loop exit
PB: predicated region body
PF: predicated region fallthrough
CT: control target
= control target key end

     0   :  { %9 = vsyncpa [#allocation3], 0  ;;  %s1629_s0 = inlined_call_operand.hbm [shape: f32[2,8,128], index: 0, kind: input, shape index: {}]   ;;  %s1630_s1 = inlined_call_operand.hbm [shape: f32[2,384,128], index: 1, kind: input, shape index: {}]   ;;  %s1631_s2 = inlined_call_operand.hbm [shape: f32[8,128], index: 2, kind: input, shape index: {}]   ;;  %s1632_s3 = inlined_call_operand.hbm [shape: f32[128,128], index: 3, kind: input, shape index: {}]   ;;  %s1633_s4 = inlined_call_operand.hbm [shape: f32[2,8,128], index: 4, kind: output, shape index: {}]  }
   0x1   :  { %10 = vsyncpa [#allocation6], 0 }
   0x2   :  { %11 = vsyncpa [#allocation9], 0 }
   0x3   :  { %12 = vsyncpa [#allocation4], 0  ;;  %s1389_s15 = smov [#allocation5]   ;;  %s1390_s17 = smov [#allocation2]  }
   0x4   :  { %s30_s16 = sshll.u32 %s1389_s15, 4  ;;  %s18_s18 = sshll.u32 %s1390_s17, 4  ;;  %s31_s16 = int_to_ptr.vmem [resolvable:$true] %s30_s16  ;;  %s1424_s18 = int_to_ptr.vmem [resolvable:$true] %s18_s18 }
   0x5   :  { %s1271_s21 = scalar_lea.hbm %s1630_s1, 12288 }
   0x6   :  { %p1272_p0 = scmp.ne.s32.totalorder %s1630_s1, %s1271_s21  ;;  %p1275_p1 = scmp.lt.u32.totalorder %s1271_s21, %s1630_s1 }
   0x8   :  { %p1277_p2 = pnand %p1275_p1, %p1272_p0 }
   0xa   :  { %1280 = shalt.err (!%p1277_p2)
}
   0xb   :  { %s1281_s26 = scalar_lea.vmem %s31_s16, 12288  ;;  %p1286_p4 = scmp.lt.s32.totalorder %s31_s16, %s31_s16 }
   0xc   :  { %p1282_p3 = scmp.ne.s32.totalorder %s31_s16, %s1281_s26  ;;  %p1287_p5 = scmp.lt.s32.totalorder %s1281_s26, %s1281_s26 }
   0xe   :  { %p1288_p6 = por %p1287_p5, %p1286_p4 }
  0x10   :  { %p1289_p7 = pnand %p1288_p6, %p1282_p3 }
  0x12   :  { %1292 = shalt.err (!%p1289_p7)
}
  0x13   :  { %s1391_s27 = smov 128   ;;  %s1392_s28 = smov 8  }
  0x14   :  { %36 = dma.hbm_to_vmem [thread:$0]  %s1630_s1, 12288, %s31_s16, [#allocation6], %s1391_s27, %s1391_s27, %s1392_s28  }
  0x15   :  { %s1293_s7 = scalar_lea.hbm %s1629_s0, 256 }
  0x16   :  { %p1294_p8 = scmp.ne.s32.totalorder %s1629_s0, %s1293_s7  ;;  %p1297_p9 = scmp.lt.u32.totalorder %s1293_s7, %s1629_s0 }
  0x18   :  { %p1299_p10 = pnand %p1297_p9, %p1294_p8 }
  0x1a   :  { %1302 = shalt.err (!%p1299_p10)
}
  0x1b   :  { %s1303_s12 = scalar_lea.vmem %s1424_s18, 256  ;;  %p1308_p12 = scmp.lt.s32.totalorder %s1424_s18, %s1424_s18 }
  0x1c   :  { %p1304_p11 = scmp.ne.s32.totalorder %s1424_s18, %s1303_s12  ;;  %p1309_p13 = scmp.lt.s32.totalorder %s1303_s12, %s1303_s12 }
  0x1e   :  { %p1310_p0 = por %p1309_p13, %p1308_p12 }
  0x20   :  { %p1311_p1 = pnand %p1310_p0, %p1304_p11 }
  0x22   :  { %1314 = shalt.err (!%p1311_p1)
}
  0x23   :  { %24 = dma.hbm_to_vmem [thread:$0]  %s1629_s0, 256, %s1424_s18, [#allocation3], %s1391_s27, %s1391_s27, %s1392_s28  }
  0x24   :  { %s1393_s14 = smov [#allocation7]   ;;  %s1394_s16 = smov [#allocation8]  }
  0x25   :  { %s43_s15 = sshll.u32 %s1393_s14, 4  ;;  %s52_s17 = sshll.u32 %s1394_s16, 4  ;;  %s44_s15 = int_to_ptr.vmem [resolvable:$true] %s43_s15  ;;  %s1461_s17 = int_to_ptr.vmem [resolvable:$true] %s52_s17 }
  0x26   :  { %s1315_s21 = scalar_lea.hbm %s1631_s2, 128 }
  0x27   :  { %p1316_p2 = scmp.ne.s32.totalorder %s1631_s2, %s1315_s21  ;;  %p1319_p3 = scmp.lt.u32.totalorder %s1315_s21, %s1631_s2 }
  0x29   :  { %p1321_p4 = pnand %p1319_p3, %p1316_p2 }
  0x2b   :  { %1324 = shalt.err (!%p1321_p4)
}
  0x2c   :  { %s1325_s0 = scalar_lea.vmem %s44_s15, 128  ;;  %p1330_p6 = scmp.lt.s32.totalorder %s44_s15, %s44_s15 }
  0x2d   :  { %p1326_p5 = scmp.ne.s32.totalorder %s44_s15, %s1325_s0  ;;  %p1331_p7 = scmp.lt.s32.totalorder %s1325_s0, %s1325_s0 }
  0x2f   :  { %p1332_p8 = por %p1331_p7, %p1330_p6 }
  0x31   :  { %p1333_p9 = pnand %p1332_p8, %p1326_p5 }
  0x33   :  { %1336 = shalt.err (!%p1333_p9)
}
  0x34   :  { %46 = dma.hbm_to_vmem [thread:$0]  %s1631_s2, 128, %s44_s15, [#allocation6]  }
  0x35   :  { %s1337_s5 = scalar_lea.hbm %s1632_s3, 2048 }
  0x36   :  { %p1338_p10 = scmp.ne.s32.totalorder %s1632_s3, %s1337_s5  ;;  %p1341_p11 = scmp.lt.u32.totalorder %s1337_s5, %s1632_s3 }
  0x38   :  { %p1343_p12 = pnand %p1341_p11, %p1338_p10 }
  0x3a   :  { %1346 = shalt.err (!%p1343_p12)
}
  0x3b   :  { %s1347_s10 = scalar_lea.vmem %s1461_s17, 2048  ;;  %p1352_p0 = scmp.lt.s32.totalorder %s1461_s17, %s1461_s17 }
  0x3c   :  { %p1348_p13 = scmp.ne.s32.totalorder %s1461_s17, %s1347_s10  ;;  %p1353_p1 = scmp.lt.s32.totalorder %s1347_s10, %s1347_s10 }
  0x3e   :  { %p1354_p2 = por %p1353_p1, %p1352_p0 }
  0x40   :  { %p1355_p3 = pnand %p1354_p2, %p1348_p13 }
  0x42   :  { %1358 = shalt.err (!%p1355_p3)
}
  0x43   :  { %58 = dma.hbm_to_vmem [thread:$0]  %s1632_s3, 2048, %s1461_s17, [#allocation9], %s1391_s27, %s1391_s27, %s1392_s28  }
  0x44   :  { %1381 = dma.done.wait [#allocation3], 256  }
  0x45   :  { %1382 = vsyncadd [#allocation3], 4294967040 }
  0x46   :  { %1383 = dma.done.wait [#allocation6], 12416  }
  0x47   :  { %1384 = vsyncadd [#allocation6], 4294954880 }
  0x48   :  { %1385 = dma.done.wait [#allocation9], 2048  }
  0x49   :  { %1386 = vsyncadd [#allocation9], 4294965248  ;;  %v106_v0 = vld [vmem:[#allocation5 + $0x80] sm:$0xff]  ;;  %v107_v1 = vld [vmem:[#allocation5 + $0x88] sm:$0xff]  ;;  %vm151_vm0 = vcmask 1046528   ;;  %vm144_vm1 = vcmask 1040384  }
  0x4a   :  { %v90_v2 = vld [vmem:[#allocation5] sm:$0xff]  ;;  %v1081_v3 = vpack.c.bf16 %v107_v1, %v106_v0  ;;  %v91_v4 = vld [vmem:[#allocation5 + $0x8] sm:$0xff]  ;;  %v108_v5 = vld [vmem:[#allocation5 + $0x90] sm:$0xff]  ;;  %vm1396_vm3 = vmmov 0   ;;  %s1398_s3 = smov [#allocation10]  }
  0x4b   :  { %v109_v6 = vld [vmem:[#allocation5 + $0x98] sm:$0xff]  ;;  %v1083_v7 = vpack.c.bf16 %v91_v4, %v90_v2  ;;  %v122_v9 = vld [vmem:[#allocation5 + $0x100] sm:$0xff]  ;;  %v123_v10 = vld [vmem:[#allocation5 + $0x108] sm:$0xff]  ;;  %s769_s12 = sshll.u32 %s1398_s3, 4  ;;  %s770_s12 = int_to_ptr.vmem [resolvable:$true] %s769_s12 }
  0x4c   :  { %v1085_v8 = vpack.c.bf16 %v109_v6, %v108_v5  ;;  %v92_v11 = vld [vmem:[#allocation5 + $0x10] sm:$0xff]  ;;  %1082 = vmatprep.subr.bf16.mxu0 %v1081_v3  ;;  %v1113_v12 = vpack.c.bf16 %v123_v10, %v122_v9  ;;  %v93_v13 = vld [vmem:[#allocation5 + $0x18] sm:$0xff]  ;;  %v110_v14 = vld [vmem:[#allocation5 + $0xa0] sm:$0xff]  ;;  %s1359_s1 = scalar_lea.vmem %s770_s12, 256  ;;  %p1364_p5 = scmp.lt.s32.totalorder %s770_s12, %s770_s12 }
  0x4d   :  { %v111_v15 = vld [vmem:[#allocation5 + $0xa8] sm:$0xff]  ;;  %1084 = vmatpush3.bf16.msra.mxu0 %v1083_v7  ;;  %v1087_v16 = vpack.c.bf16 %v93_v13, %v92_v11  ;;  %v124_v17 = vld [vmem:[#allocation5 + $0x110] sm:$0xff]  ;;  %v125_v18 = vld [vmem:[#allocation5 + $0x118] sm:$0xff]  ;;  %p1360_p4 = scmp.ne.s32.totalorder %s770_s12, %s1359_s1  ;;  %p1365_p6 = scmp.lt.s32.totalorder %s1359_s1, %s1359_s1 }
  0x4e   :  { %1086 = vmatprep.subr.bf16.mxu0 %v1085_v8  ;;  %1114 = vmatprep.subr.bf16.mxu1 %v1113_v12  ;;  %v1089_v19 = vpack.c.bf16 %v111_v15, %v110_v14  ;;  %v1117_v20 = vpack.c.bf16 %v125_v18, %v124_v17  ;;  %v94_v21 = vld [vmem:[#allocation5 + $0x20] sm:$0xff]  ;;  %v95_v22 = vld [vmem:[#allocation5 + $0x28] sm:$0xff]  ;;  %v112_v23 = vld [vmem:[#allocation5 + $0xb0] sm:$0xff]  ;;  %v1395_v17 = vmov 0.0|0.0  }
  0x4f   :  { %1116 = vmatpush3.bf16.msra.mxu1 %v1113_v12  ;;  %v113_v24 = vld [vmem:[#allocation5 + $0xb8] sm:$0xff]  ;;  %v126_v25 = vld [vmem:[#allocation5 + $0x120] sm:$0xff]  ;;  %v127_v26 = vld [vmem:[#allocation5 + $0x128] sm:$0xff]  ;;  %v1091_v28 = vpack.c.bf16 %v95_v22, %v94_v21  ;;  %p1366_p7 = por %p1365_p6, %p1364_p5 }
  0x50   :  { %1118 = vmatprep.subr.bf16.mxu1 %v1117_v20  ;;  %v1121_v27 = vpack.c.bf16 %v127_v26, %v126_v25  ;;  %v128_v29 = vld [vmem:[#allocation5 + $0x130] sm:$0xff]  ;;  %v129_v30 = vld [vmem:[#allocation5 + $0x138] sm:$0xff]  ;;  %v1093_v31 = vpack.c.bf16 %v113_v24, %v112_v23  ;;  %v114_v34 = vld [vmem:[#allocation5 + $0xc0] sm:$0xff] }
  0x51   :  { %1088 = vmatpush3.bf16.msra.mxu0 %v1087_v16  ;;  %v96_v32 = vld [vmem:[#allocation5 + $0x30] sm:$0xff]  ;;  %v97_v33 = vld [vmem:[#allocation5 + $0x38] sm:$0xff]  ;;  %v115_v35 = vld [vmem:[#allocation5 + $0xc8] sm:$0xff]  ;;  %v1125_v36 = vpack.c.bf16 %v129_v30, %v128_v29  ;;  %p1367_p8 = pnand %p1366_p7, %p1360_p4 }
  0x52   :  { %1090 = vmatprep.subr.bf16.mxu0 %v1089_v19  ;;  %v1095_v37 = vpack.c.bf16 %v97_v33, %v96_v32  ;;  %v130_v38 = vld [vmem:[#allocation5 + $0x140] sm:$0xff]  ;;  %v131_v39 = vld [vmem:[#allocation5 + $0x148] sm:$0xff]  ;;  %v1097_v40 = vpack.c.bf16 %v115_v35, %v114_v34  ;;  %v116_v43 = vld [vmem:[#allocation5 + $0xd0] sm:$0xff] }
  0x53   :  { %1120 = vmatpush3.bf16.msra.mxu1 %v1117_v20  ;;  %v98_v41 = vld [vmem:[#allocation5 + $0x40] sm:$0xff]  ;;  %v99_v42 = vld [vmem:[#allocation5 + $0x48] sm:$0xff]  ;;  %v117_v44 = vld [vmem:[#allocation5 + $0xd8] sm:$0xff]  ;;  %v1129_v45 = vpack.c.bf16 %v131_v39, %v130_v38 }
  0x54   :  { %1122 = vmatprep.subr.bf16.mxu1 %v1121_v27  ;;  %v1495_v46 = vld [vmem:[#allocation2] sm:$0xff]  ;;  %v1099_v47 = vpack.c.bf16 %v99_v42, %v98_v41  ;;  %v133_v49 = vld [vmem:[#allocation5 + $0x158] sm:$0xff]  ;;  %v1101_v51 = vpack.c.bf16 %v117_v44, %v116_v43  ;;  %v118_v54 = vld [vmem:[#allocation5 + $0xe0] sm:$0xff]  ;;  %v154_v41 = vlaneseq }
  0x55   :  { %1092 = vmatpush3.bf16.msra.mxu0 %v1091_v28  ;;  %v132_v48 = vld [vmem:[#allocation5 + $0x150] sm:$0xff]  ;;  %222 = vmatprep.mubr.f32.mxu0 %v1495_v46  ;;  %v147_v50 = vrot.slane %v1495_v46, 1  ;;  %v101_v53 = vld [vmem:[#allocation5 + $0x58] sm:$0xff]  ;;  %v119_v55 = vld [vmem:[#allocation5 + $0xe8] sm:$0xff]  ;;  %v140_v13 = vrot.slane %v1495_v46, 7 }
  0x56   :  { %1094 = vmatprep.subr.bf16.mxu0 %v1093_v31  ;;  %v100_v52 = vld [vmem:[#allocation5 + $0x50] sm:$0xff]  ;;  %v1133_v56 = vpack.c.bf16 %v133_v49, %v132_v48  ;;  %v134_v58 = vld [vmem:[#allocation5 + $0x160] sm:$0xff]  ;;  %v135_v59 = vld [vmem:[#allocation5 + $0x168] sm:$0xff]  ;;  %v1105_v60 = vpack.c.bf16 %v119_v55, %v118_v54  ;;  %v1550_v42 = vshrl.u32 %v154_v41, 7 }
  0x57   :  { %1124 = vmatpush3.bf16.msra.mxu1 %v1121_v27  ;;  %973 = vmatprep.mubr.msk.f32.mxu1 %vm151_vm0, %v147_v50  ;;  %v1103_v57 = vpack.c.bf16 %v101_v53, %v100_v52  ;;  %v102_v61 = vld [vmem:[#allocation5 + $0x60] sm:$0xff]  ;;  %v103_v62 = vld [vmem:[#allocation5 + $0x68] sm:$0xff]  ;;  %v120_v63 = vld [vmem:[#allocation5 + $0xf0] sm:$0xff]  ;;  %v1137_v1 = vpack.c.bf16 %v135_v59, %v134_v58 }
  0x58   :  { %1126 = vmatprep.subr.bf16.mxu1 %v1125_v36  ;;  %v121_v0 = vld [vmem:[#allocation5 + $0xf8] sm:$0xff]  ;;  %v1107_v2 = vpack.c.bf16 %v103_v62, %v102_v61  ;;  %v136_v3 = vld [vmem:[#allocation5 + $0x170] sm:$0xff]  ;;  %v73_v10 = vld [vmem:[#allocation8] sm:$0xff]  ;;  %v1553_v43 = vsub.s32 0, %v1550_v42  ;;  %v489_v14 = vsub.s32 3, %v1550_v42 }
  0x59   :  { %1096 = vmatpush3.bf16.msra.mxu0 %v1095_v37  ;;  %v137_v4 = vld [vmem:[#allocation5 + $0x178] sm:$0xff]  ;;  %v1109_v5 = vpack.c.bf16 %v121_v0, %v120_v63  ;;  %v104_v6 = vld [vmem:[#allocation5 + $0x70] sm:$0xff]  ;;  %vm1504_vm2 = vmneg %vm144_vm1 }
  0x5a   :  { %1098 = vmatprep.subr.bf16.mxu0 %v1097_v40  ;;  %v105_v7 = vld [vmem:[#allocation5 + $0x78] sm:$0xff]  ;;  %v1141_v8 = vpack.c.bf16 %v137_v4, %v136_v3  ;;  %v74_v11 = vld [vmem:[#allocation8 + $0x8] sm:$0xff]  ;;  %v76_v20 = vld [vmem:[#allocation8 + $0x18] sm:$0xff]  ;;  %v1397_v40 = vmov 0.0  }
  0x5b   :  { %1128 = vmatpush3.bf16.msra.mxu1 %v1125_v36  ;;  %v1111_v9 = vpack.c.bf16 %v105_v7, %v104_v6  ;;  %v1500_v12 = vld [vmem:[#allocation2 + $0x8] sm:$0xff]  ;;  %v1508_v15 = vpack.c.bf16 %v74_v11, %v73_v10  ;;  %v77_v22 = vld [vmem:[#allocation8 + $0x20] sm:$0xff]  ;;  %v78_v23 = vld [vmem:[#allocation8 + $0x28] sm:$0xff] }
  0x5c   :  { %1130 = vmatprep.subr.bf16.mxu1 %v1129_v45  ;;  %v148_v16 = vrot.slane %v1500_v12, 1  ;;  %v141_v18 = vrot.slane %v1500_v12, 7  ;;  %v75_v19 = vld [vmem:[#allocation8 + $0x10] sm:$0xff]  ;;  %v1525_v24 = vpack.c.bf16 %v78_v23, %v77_v22  ;;  %v80_v26 = vld [vmem:[#allocation8 + $0x38] sm:$0xff]  ;;  %v81_v28 = vld [vmem:[#allocation8 + $0x40] sm:$0xff] }
  0x5d   :  { %1100 = vmatpush3.bf16.msra.mxu0 %v1099_v47  ;;  %v1521_v21 = vpack.c.bf16 %v76_v20, %v75_v19  ;;  %v79_v25 = vld [vmem:[#allocation8 + $0x30] sm:$0xff]  ;;  %v82_v29 = vld [vmem:[#allocation8 + $0x48] sm:$0xff]  ;;  %v84_v32 = vld [vmem:[#allocation8 + $0x58] sm:$0xff] }
  0x5e   :  { %1102 = vmatprep.subr.bf16.mxu0 %v1101_v51  ;;  %v1529_v27 = vpack.c.bf16 %v80_v26, %v79_v25  ;;  %v1533_v30 = vpack.c.bf16 %v82_v29, %v81_v28  ;;  %v83_v31 = vld [vmem:[#allocation8 + $0x50] sm:$0xff]  ;;  %v85_v34 = vld [vmem:[#allocation8 + $0x60] sm:$0xff]  ;;  %v86_v35 = vld [vmem:[#allocation8 + $0x68] sm:$0xff] }
  0x5f   :  { %1132 = vmatpush3.bf16.msra.mxu1 %v1129_v45  ;;  %v1537_v33 = vpack.c.bf16 %v84_v32, %v83_v31  ;;  %v1541_v36 = vpack.c.bf16 %v86_v35, %v85_v34  ;;  %v87_v37 = vld [vmem:[#allocation8 + $0x70] sm:$0xff]  ;;  %v88_v38 = vld [vmem:[#allocation8 + $0x78] sm:$0xff]  ;;  %v426_v20 = vld [vmem:[#allocation5 + $0x188] sm:$0xff] }
  0x60   :  { %1134 = vmatprep.subr.bf16.mxu1 %v1133_v56  ;;  %v1545_v39 = vpack.c.bf16 %v88_v38, %v87_v37  ;;  %v1555_v44 = vld [vmem:[#allocation7] sm:$0xff]  ;;  %v458_v25 = vld [vmem:[#allocation5 + $0x288] sm:$0xff]  ;;  %v443_v28 = vld [vmem:[#allocation5 + $0x210] sm:$0xff] }
  0x61   :  { %1104 = vmatpush3.bf16.msra.mxu0 %v1103_v57  ;;  %v157_v47 = vrot.slane %v1555_v44, %v1553_v43  ;;  %v425_v19 = vld [vmem:[#allocation5 + $0x180] sm:$0xff]  ;;  %v444_v29 = vld [vmem:[#allocation5 + $0x218] sm:$0xff]  ;;  %v427_v32 = vld [vmem:[#allocation5 + $0x190] sm:$0xff] }
  0x62   :  { %1106 = vmatprep.subr.bf16.mxu0 %v1105_v60  ;;  %v457_v22 = vld [vmem:[#allocation5 + $0x280] sm:$0xff]  ;;  %v1171_v23 = vpack.c.bf16 %v426_v20, %v425_v19  ;;  %v1173_v31 = vpack.c.bf16 %v444_v29, %v443_v28  ;;  %v428_v34 = vld [vmem:[#allocation5 + $0x198] sm:$0xff]  ;;  %v459_v35 = vld [vmem:[#allocation5 + $0x290] sm:$0xff] }
  0x63   :  { %1136 = vmatpush3.bf16.msra.mxu1 %v1133_v56  ;;  %v1201_v26 = vpack.c.bf16 %v458_v25, %v457_v22  ;;  %v1175_v37 = vpack.c.bf16 %v428_v34, %v427_v32  ;;  %v460_v38 = vld [vmem:[#allocation5 + $0x298] sm:$0xff]  ;;  %v467_v20 = vld [vmem:[#allocation5 + $0x2d0] sm:$0xff]  ;;  %v454_v25 = vld [vmem:[#allocation5 + $0x268] sm:$0xff] }
  0x64   :  { %1138 = vmatprep.subr.bf16.mxu1 %v1137_v1  ;;  %v1205_v41 = vpack.c.bf16 %v460_v38, %v459_v35  ;;  %v436_v19 = vld [vmem:[#allocation5 + $0x1d8] sm:$0xff]  ;;  %v469_v29 = vld [vmem:[#allocation5 + $0x2e0] sm:$0xff]  ;;  %v438_v35 = vld [vmem:[#allocation5 + $0x1e8] sm:$0xff] }
  0x65   :  { %1108 = vmatpush3.bf16.msra.mxu0 %v1107_v2  ;;  %v468_v22 = vld [vmem:[#allocation5 + $0x2d8] sm:$0xff]  ;;  %v437_v34 = vld [vmem:[#allocation5 + $0x1e0] sm:$0xff] }
  0x66   :  { %1110 = vmatprep.subr.bf16.mxu0 %v1109_v5  ;;  %v456_v38 = vld [vmem:[#allocation5 + $0x278] sm:$0xff] }
  0x67   :  { %1140 = vmatpush3.bf16.msra.mxu1 %v1137_v1 }
  0x68   :  { %1142 = vmatprep.subr.bf16.mxu1 %v1141_v8 }
  0x69   :  { %1112 = vmatpush3.bf16.msra.mxu0 %v1111_v9 }
  0x6a   :  { %1145 = vmatprep.subr.bf16.mxu0 %v1395_v17 }
  0x6b   :  { %1144 = vmatpush3.bf16.msra.mxu1 %v1141_v8 }
  0x6c   :  { %784 = vmatmul.mubr.msk.f32.vlgmr.msra.gmra.mrb[0].mxu0 %vm1504_vm2, %v140_v13  ;;  %v441_v13 = vld [vmem:[#allocation5 + $0x200] sm:$0xff] }
  0x6d   :  { %227 = vmatprep.mubr.f32.mxu0 %v1500_v12  ;;  %1147 = vmatpush3.bf16.msra.mxu0 %v1508_v15 }
  0x6e   :  { %974 = vmatmul.mubr.msk.f32.vlgmr.msra.gmra.mrb[0].mxu1 %vm151_vm0, %v148_v16  ;;  %1148 = vmatprep.subr.bf16.mxu0 %v1395_v17  ;;  %v442_v16 = vld [vmem:[#allocation5 + $0x208] sm:$0xff] }
  0x70   :  { %786 = vmatmul.mubr.msk.f32.gmra.mrb[2].mxu0 %vm1504_vm2, %v141_v18  ;;  %v1169_v18 = vpack.c.bf16 %v442_v16, %v441_v13  ;;  %v452_v13 = vld [vmem:[#allocation5 + $0x258] sm:$0xff]  ;;  %v435_v16 = vld [vmem:[#allocation5 + $0x1d0] sm:$0xff] }
  0x71   :  { %1150 = vmatpush3.bf16.msra.mxu0 %v1521_v21  ;;  %1008 = vmatprep.mubr.msk.f32.mxu0 %vm1396_vm3, %v1397_v40  ;;  %v1191_v28 = vpack.c.bf16 %v436_v19, %v435_v16 }
  0x72   :  { %1151 = vmatprep.subr.bf16.mxu0 %v1395_v17  ;;  %1170 = vmatprep.subr.bf16.mxu1 %v1169_v18 }
  0x73   :  { %1172 = vmatpush3.bf16.msra.mxu1 %v1171_v23  ;;  %v453_v23 = vld [vmem:[#allocation5 + $0x260] sm:$0xff] }
  0x74   :  { %1174 = vmatprep.subr.bf16.mxu1 %v1173_v31  ;;  %v470_v31 = vld [vmem:[#allocation5 + $0x2e8] sm:$0xff]  ;;  %v1193_v32 = vpack.c.bf16 %v454_v25, %v453_v23 }
  0x75   :  { %1153 = vmatpush3.bf16.msra.mxu0 %v1525_v24 }
  0x76   :  { %1154 = vmatprep.subr.bf16.mxu0 %v1395_v17 }
  0x77   :  { %1176 = vmatpush3.bf16.msra.mxu1 %v1175_v37  ;;  %v455_v37 = vld [vmem:[#allocation5 + $0x270] sm:$0xff] }
  0x79   :  { %1156 = vmatpush3.bf16.msra.mxu0 %v1529_v27 }
  0x7a   :  { %1157 = vmatprep.subr.bf16.mxu0 %v1395_v17 }
  0x7d   :  { %1159 = vmatpush3.bf16.msra.mxu0 %v1533_v30 }
  0x7e   :  { %1160 = vmatprep.subr.bf16.mxu0 %v1395_v17 }
  0x81   :  { %1162 = vmatpush3.bf16.msra.mxu0 %v1537_v33 }
  0x82   :  { %1163 = vmatprep.subr.bf16.mxu0 %v1395_v17 }
  0x85   :  { %1165 = vmatpush3.bf16.msra.mxu0 %v1541_v36 }
  0x86   :  { %1166 = vmatprep.subr.bf16.mxu0 %v1395_v17 }
  0x89   :  { %1168 = vmatpush3.bf16.msra.mxu0 %v1545_v39 }
  0x8a   :  { %1202 = vmatprep.subr.bf16.mxu0 %v1201_v26 }
 0x13f   :  { %v827_v45 = vpop.f32.mrb[0].mxu0 }
 0x140   :  { %v828_v48 = vpop.f32.mrb[1].mxu0 }
 0x141   :  { %v829_v49 = vadd.f32 %v828_v48, %v827_v45  ;;  %v975_v50 = vpop.f32.mrb[0].mxu1  ;;  %v445_v45 = vld [vmem:[#allocation5 + $0x220] sm:$0xff] }
 0x142   :  { %v299_v51 = vpop.f32.mrb[1].mxu1 }
 0x143   :  { %v830_v52 = vpop.f32.mrb[2].mxu0  ;;  %v225_v53 = vadd.f32 %v829_v49, %v157_v47  ;;  %v429_v49 = vld [vmem:[#allocation5 + $0x1a0] sm:$0xff] }
 0x144   :  { %v831_v54 = vpop.f32.mrb[3].mxu0 }
 0x145   :  { %v832_v55 = vadd.f32 %v831_v54, %v830_v52  ;;  %v1559_v56 = vadd.f32 %v299_v51, %v225_v53  ;;  %v461_v51 = vld [vmem:[#allocation5 + $0x2a0] sm:$0xff]  ;;  %v462_v53 = vld [vmem:[#allocation5 + $0x2a8] sm:$0xff] }
 0x146   :  { %v1209_v54 = vpack.c.bf16 %v462_v53, %v461_v51  ;;  %v440_v51 = vld [vmem:[#allocation5 + $0x1f8] sm:$0xff] }
 0x147   :  { %v230_v57 = vadd.f32 %v832_v55, %v157_v47  ;;  %v315_v60 = vmul.f32 %v1559_v56, %v1559_v56  ;;  %v446_v47 = vld [vmem:[#allocation5 + $0x228] sm:$0xff]  ;;  %v447_v55 = vld [vmem:[#allocation5 + $0x230] sm:$0xff] }
 0x148   :  { %v1177_v48 = vpack.c.bf16 %v446_v47, %v445_v45  ;;  %v1195_v45 = vpack.c.bf16 %v438_v35, %v437_v34  ;;  %v471_v47 = vld [vmem:[#allocation5 + $0x2f0] sm:$0xff] }
 0x149   :  { %v1561_v58 = vadd.f32 %v975_v50, %v230_v57  ;;  %v430_v50 = vld [vmem:[#allocation5 + $0x1a8] sm:$0xff]  ;;  %v448_v57 = vld [vmem:[#allocation5 + $0x238] sm:$0xff] }
 0x14a   :  { %v1179_v52 = vpack.c.bf16 %v430_v50, %v429_v49  ;;  %1178 = vmatprep.subr.bf16.mxu1 %v1177_v48  ;;  %v472_v48 = vld [vmem:[#allocation5 + $0x2f8] sm:$0xff]  ;;  %v1197_v49 = vpack.c.bf16 %v456_v38, %v455_v37  ;;  %v439_v50 = vld [vmem:[#allocation5 + $0x1f0] sm:$0xff] }
 0x14b   :  { %v308_v59 = vadd.f32 %v1561_v58, %v1559_v56  ;;  %v316_v61 = vmul.f32 %v1561_v58, %v1561_v58  ;;  %v1199_v53 = vpack.c.bf16 %v440_v51, %v439_v50 }
 0x14c   :  { %1180 = vmatpush3.bf16.msra.mxu1 %v1179_v52  ;;  %v1229_v52 = vpack.c.bf16 %v472_v48, %v471_v47 }
 0x14d   :  { %v309_v62 = vrot.slane %v308_v59, 4  ;;  %v317_v63 = vadd.f32 %v316_v61, %v315_v60  ;;  %v1181_v60 = vpack.c.bf16 %v448_v57, %v447_v55  ;;  %v432_v61 = vld [vmem:[#allocation5 + $0x1b8] sm:$0xff] }
 0x14f   :  { %v310_v0 = vadd.f32 %v309_v62, %v308_v59  ;;  %v318_v1 = vrot.slane %v317_v63, 4  ;;  %v431_v59 = vld [vmem:[#allocation5 + $0x1b0] sm:$0xff]  ;;  %1182 = vmatprep.subr.bf16.mxu1 %v1181_v60 }
 0x150   :  { %v463_v62 = vld [vmem:[#allocation5 + $0x2b0] sm:$0xff] }
 0x151   :  { %v311_v2 = vrot.slane %v310_v0, 2  ;;  %v319_v3 = vadd.f32 %v318_v1, %v317_v63  ;;  %v464_v63 = vld [vmem:[#allocation5 + $0x2b8] sm:$0xff] }
 0x152   :  { %v1213_v1 = vpack.c.bf16 %v464_v63, %v463_v62 }
 0x153   :  { %v312_v4 = vadd.f32 %v311_v2, %v310_v0  ;;  %v320_v5 = vrot.slane %v319_v3, 2  ;;  %v1183_v0 = vpack.c.bf16 %v432_v61, %v431_v59  ;;  %v449_v2 = vld [vmem:[#allocation5 + $0x240] sm:$0xff] }
 0x155   :  { %v313_v6 = vrot.slane %v312_v4, 1  ;;  %v321_v7 = vadd.f32 %v320_v5, %v319_v3  ;;  %v450_v3 = vld [vmem:[#allocation5 + $0x248] sm:$0xff]  ;;  %1184 = vmatpush3.bf16.msra.mxu1 %v1183_v0  ;;  %v412_v0 = vsub.s32 1, %v1550_v42 }
 0x156   :  { %v1185_v5 = vpack.c.bf16 %v450_v3, %v449_v2 }
 0x157   :  { %v322_v8 = vrot.slane %v321_v7, 1  ;;  %v314_v9 = vadd.f32 %v313_v6, %v312_v4  ;;  %v433_v4 = vld [vmem:[#allocation5 + $0x1c0] sm:$0xff]  ;;  %v434_v6 = vld [vmem:[#allocation5 + $0x1c8] sm:$0xff] }
 0x158   :  { %1186 = vmatprep.subr.bf16.mxu1 %v1185_v5 }
 0x159   :  { %v323_v10 = vadd.f32 %v322_v8, %v321_v7  ;;  %v465_v7 = vld [vmem:[#allocation5 + $0x2c0] sm:$0xff]  ;;  %v466_v8 = vld [vmem:[#allocation5 + $0x2c8] sm:$0xff] }
 0x15b   :  { %v324_v11 = vsel %vm144_vm1, %v314_v9, %v323_v10  ;;  %v1187_v9 = vpack.c.bf16 %v434_v6, %v433_v4  ;;  %v1217_v10 = vpack.c.bf16 %v466_v8, %v465_v7 }
 0x15c   :  { %1009 = vmatmul.mubr.f32.vlgmr.msra.gmra.mrb[4].mxu0 %v324_v11  ;;  %v451_v11 = vld [vmem:[#allocation5 + $0x250] sm:$0xff] }
 0x15d   :  { %1204 = vmatpush3.bf16.msra.mxu0 %v1201_v26  ;;  %v1189_v18 = vpack.c.bf16 %v452_v13, %v451_v11  ;;  %v1221_v26 = vpack.c.bf16 %v468_v22, %v467_v20  ;;  %1188 = vmatpush3.bf16.msra.mxu1 %v1187_v9 }
 0x15e   :  { %1206 = vmatprep.subr.bf16.mxu0 %v1205_v41 }
 0x15f   :  { %1190 = vmatprep.subr.bf16.mxu1 %v1189_v18 }
 0x161   :  { %1208 = vmatpush3.bf16.msra.mxu0 %v1205_v41  ;;  %v1225_v41 = vpack.c.bf16 %v470_v31, %v469_v29  ;;  %1192 = vmatpush3.bf16.msra.mxu1 %v1191_v28 }
 0x162   :  { %1210 = vmatprep.subr.bf16.mxu0 %v1209_v54  ;;  %1194 = vmatprep.subr.bf16.mxu1 %v1193_v32 }
 0x165   :  { %1212 = vmatpush3.bf16.msra.mxu0 %v1209_v54  ;;  %1196 = vmatpush3.bf16.msra.mxu1 %v1195_v45 }
 0x166   :  { %1214 = vmatprep.subr.bf16.mxu0 %v1213_v1  ;;  %1198 = vmatprep.subr.bf16.mxu1 %v1197_v49 }
 0x169   :  { %1216 = vmatpush3.bf16.msra.mxu0 %v1213_v1  ;;  %1200 = vmatpush3.bf16.msra.mxu1 %v1199_v53  ;;  %v418_v1 = vsub.s32 2, %v1550_v42 }
 0x16a   :  { %1218 = vmatprep.subr.bf16.mxu0 %v1217_v10  ;;  %1233 = vmatprep.subr.bf16.mxu1 %v1395_v17 }
 0x16b   :  { %v419_v7 = vrot.slane %v1555_v44, %v418_v1 }
 0x16d   :  { %1220 = vmatpush3.bf16.msra.mxu0 %v1217_v10 }
 0x16e   :  { %1222 = vmatprep.subr.bf16.mxu0 %v1221_v26 }
 0x171   :  { %1224 = vmatpush3.bf16.msra.mxu0 %v1221_v26 }
 0x172   :  { %1226 = vmatprep.subr.bf16.mxu0 %v1225_v41 }
 0x175   :  { %1228 = vmatpush3.bf16.msra.mxu0 %v1225_v41 }
 0x176   :  { %1230 = vmatprep.subr.bf16.mxu0 %v1229_v52 }
 0x179   :  { %1232 = vmatpush3.bf16.msra.mxu0 %v1229_v52 }
 0x22f   :  { %v391_v54 = vpop.f32.mrb[4].mxu0 }
 0x230   :  { %v395_v55 = vmul.f32 0.001953125, %v391_v54  ;;  %v1010_v57 = vpop.f32.mrb[5].mxu0 }
 0x232   :  { %v396_v59 = vmul.f32 %v395_v55, %v395_v55  ;;  %v407_v63 = vrot.slane %v395_v55, %v1553_v43 }
 0x234   :  { %v398_v60 = vrot.slane %v396_v59, 7  ;;  %v408_v4 = vsub.f32 %v1559_v56, %v407_v63  ;;  %v409_v5 = vsub.f32 %v1561_v58, %v407_v63  ;;  %v756_v63 = vsub.s32 5, %v1550_v42 }
 0x236   :  { %v400_v61 = vsub.f32 %v395_v55, %v398_v60 }
 0x238   :  { %v401_v62 = vadd.f32 1e-05, %v400_v61  ;;  %v739_v61 = vrot.slane %v1555_v44, 3 }
 0x23a   :  { %1267 = vrsqrt.f32 %v401_v62 }
 0x244   :  { %v1268_v2 = vpop.eup %1267 }
 0x245   :  { %v403_v3 = vmul.f32 %v1268_v2, %v1555_v44 }
 0x247   :  { %v413_v6 = vrot.slane %v403_v3, %v412_v0 }
 0x249   :  { %v414_v8 = vmul.f32 %v413_v6, %v408_v4  ;;  %v415_v9 = vmul.f32 %v413_v6, %v409_v5  ;;  %v757_v6 = vrot.slane %v1555_v44, %v756_v63 }
 0x24b   :  { %v420_v10 = vadd.f32 %v419_v7, %v414_v8  ;;  %v421_v11 = vadd.f32 %v419_v7, %v415_v9 }
 0x24d   :  { %v422_v13 = vmax.f32 %v420_v10, 0.0  ;;  %v423_v16 = vmax.f32 %v421_v11, 0.0 }
 0x24f   :  { %v475_v18 = vrot.slane %v422_v13, 7  ;;  %555 = vmatprep.mubr.f32.mxu1 %v422_v13  ;;  %v481_v19 = vrot.slane %v422_v13, 1  ;;  %v482_v20 = vrot.slane %v423_v16, 1  ;;  %v476_v56 = vrot.slane %v423_v16, 7 }
 0x251   :  { %790 = vmatmul.mubr.msk.f32.vlgmr.msra.gmra.mrb[2].mxu1 %vm1504_vm2, %v475_v18  ;;  %1043 = vmatprep.mubr.msk.f32.mxu0 %vm151_vm0, %v481_v19 }
 0x252   :  { %560 = vmatprep.mubr.f32.mxu1 %v423_v16  ;;  %1044 = vmatmul.mubr.msk.f32.vlgmr.msra.gmra.mrb[6].mxu0 %vm151_vm0, %v482_v20 }
 0x253   :  { %1235 = vmatpush3.bf16.msra.mxu1 %v1508_v15 }
 0x254   :  { %1236 = vmatprep.subr.bf16.mxu1 %v1395_v17 }
 0x255   :  { %792 = vmatmul.mubr.msk.f32.gmra.mrb[4].mxu1 %vm1504_vm2, %v476_v56 }
 0x256   :  { %1078 = vmatprep.mubr.msk.f32.mxu1 %vm1396_vm3, %v1397_v40 }
 0x257   :  { %1238 = vmatpush3.bf16.msra.mxu1 %v1521_v21  ;;  %v490_v21 = vrot.slane %v1555_v44, %v489_v14 }
 0x258   :  { %1239 = vmatprep.subr.bf16.mxu1 %v1395_v17 }
 0x25b   :  { %1241 = vmatpush3.bf16.msra.mxu1 %v1525_v24 }
 0x25c   :  { %1242 = vmatprep.subr.bf16.mxu1 %v1395_v17 }
 0x25f   :  { %1244 = vmatpush3.bf16.msra.mxu1 %v1529_v27 }
 0x260   :  { %1245 = vmatprep.subr.bf16.mxu1 %v1395_v17 }
 0x263   :  { %1247 = vmatpush3.bf16.msra.mxu1 %v1533_v30 }
 0x264   :  { %1248 = vmatprep.subr.bf16.mxu1 %v1395_v17 }
 0x267   :  { %1250 = vmatpush3.bf16.msra.mxu1 %v1537_v33 }
 0x268   :  { %1251 = vmatprep.subr.bf16.mxu1 %v1395_v17 }
 0x26b   :  { %1253 = vmatpush3.bf16.msra.mxu1 %v1541_v36 }
 0x26c   :  { %1254 = vmatprep.subr.bf16.mxu1 %v1395_v17 }
 0x26f   :  { %1256 = vmatpush3.bf16.msra.mxu1 %v1545_v39 }
 0x324   :  { %v900_v15 = vpop.f32.mrb[2].mxu1 }
 0x325   :  { %v901_v24 = vpop.f32.mrb[3].mxu1  ;;  %v1045_v27 = vpop.f32.mrb[6].mxu0 }
 0x326   :  { %v902_v30 = vadd.f32 %v901_v24, %v900_v15  ;;  %v632_v40 = vpop.f32.mrb[7].mxu0 }
 0x328   :  { %v558_v58 = vadd.f32 %v902_v30, %v490_v21  ;;  %v903_v22 = vpop.f32.mrb[4].mxu1 }
 0x329   :  { %v904_v33 = vpop.f32.mrb[5].mxu1 }
 0x32a   :  { %v633_v23 = vadd.f32 %v632_v40, %v558_v58  ;;  %v905_v25 = vadd.f32 %v904_v33, %v903_v22 }
 0x32c   :  { %v563_v26 = vadd.f32 %v905_v25, %v490_v21  ;;  %v641_v36 = vadd.f32 %v633_v23, %v1495_v46 }
 0x32e   :  { %v638_v17 = vadd.f32 %v1045_v27, %v563_v26  ;;  %v650_v28 = vmul.f32 %v641_v36, %v641_v36 }
 0x330   :  { %v642_v39 = vadd.f32 %v638_v17, %v1500_v12 }
 0x332   :  { %v643_v29 = vadd.f32 %v642_v39, %v641_v36  ;;  %v651_v31 = vmul.f32 %v642_v39, %v642_v39 }
 0x334   :  { %v644_v32 = vrot.slane %v643_v29, 4  ;;  %v652_v34 = vadd.f32 %v651_v31, %v650_v28 }
 0x336   :  { %v645_v35 = vadd.f32 %v644_v32, %v643_v29  ;;  %v653_v37 = vrot.slane %v652_v34, 4 }
 0x338   :  { %v646_v38 = vrot.slane %v645_v35, 2  ;;  %v654_v41 = vadd.f32 %v653_v37, %v652_v34 }
 0x33a   :  { %v647_v45 = vadd.f32 %v646_v38, %v645_v35  ;;  %v655_v47 = vrot.slane %v654_v41, 2 }
 0x33c   :  { %v648_v48 = vrot.slane %v647_v45, 1  ;;  %v656_v49 = vadd.f32 %v655_v47, %v654_v41 }
 0x33e   :  { %v657_v50 = vrot.slane %v656_v49, 1  ;;  %v649_v51 = vadd.f32 %v648_v48, %v647_v45 }
 0x340   :  { %v658_v52 = vadd.f32 %v657_v50, %v656_v49 }
 0x342   :  { %v659_v46 = vsel %vm144_vm1, %v649_v51, %v658_v52 }
 0x343   :  { %1079 = vmatmul.mubr.f32.vlgmr.msra.gmra.mrb[6].mxu1 %v659_v46 }
 0x416   :  { %v726_v12 = vpop.f32.mrb[6].mxu1 }
 0x417   :  { %v730_v53 = vmul.f32 0.001953125, %v726_v12  ;;  %v1080_v54 = vpop.f32.mrb[7].mxu1 }
 0x419   :  { %v731_v55 = vmul.f32 %v730_v53, %v730_v53  ;;  %v745_v62 = vrot.slane %v730_v53, %v1553_v43 }
 0x41b   :  { %v733_v57 = vrot.slane %v731_v55, 7  ;;  %v746_v3 = vsub.f32 %v641_v36, %v745_v62  ;;  %v747_v4 = vsub.f32 %v642_v39, %v745_v62 }
 0x41d   :  { %v735_v59 = vsub.f32 %v730_v53, %v733_v57 }
 0x41f   :  { %v736_v60 = vadd.f32 1e-05, %v735_v59 }
 0x421   :  { %1269 = vrsqrt.f32 %v736_v60 }
 0x42b   :  { %v1270_v1 = vpop.eup %1269 }
 0x42c   :  { %v741_v2 = vmul.f32 %v1270_v1, %v739_v61 }
 0x42e   :  { %v751_v5 = vrot.slane %v741_v2, %v412_v0 }
 0x430   :  { %v752_v7 = vmul.f32 %v751_v5, %v746_v3  ;;  %v753_v8 = vmul.f32 %v751_v5, %v747_v4 }
 0x432   :  { %v758_v9 = vadd.f32 %v757_v6, %v752_v7  ;;  %v759_v10 = vadd.f32 %v757_v6, %v753_v8 }
 0x434   :  { %v760_v11 = vmax.f32 %v758_v9, 0.0  ;;  %v761_v13 = vmax.f32 %v759_v10, 0.0 }
 0x436   :  { %762 = vst [vmem:[#allocation10] sm:$0xff] %v760_v11  ;;  %763 = vst [vmem:[#allocation10 + $0x8] sm:$0xff] %v761_v13 }
 0x437   :  { %1370 = shalt.err (!%p1367_p8)
}
 0x438   :  { %s1371_s15 = scalar_lea.hbm %s1633_s4, 256 }
 0x439   :  { %p1372_p9 = scmp.ne.s32.totalorder %s1633_s4, %s1371_s15  ;;  %p1375_p10 = scmp.lt.u32.totalorder %s1371_s15, %s1633_s4 }
 0x43b   :  { %p1377_p11 = pnand %p1375_p10, %p1372_p9 }
 0x43d   :  { %1380 = shalt.err (!%p1377_p11)
}
 0x43e   :  { %775 = dma.vmem_to_hbm [thread:$0]  %s770_s12, 256, %s1633_s4, [#allocation4], %s1391_s27, %s1391_s27, %s1392_s28  }
 0x43f   :  { %1387 = dma.done.wait [#allocation4], 256  }
 0x440   :  { %1388 = vsyncadd [#allocation4], 4294967040 }
 0x441   :  { %779 = vsyncpa [#allocation3], 1 }
 0x442   :  { %780 = vsyncpa [#allocation6], 1 }
 0x443   :  { %781 = vsyncpa [#allocation9], 1 }
 0x444   :  { %782 = vsyncpa [#allocation4], 1 }

</bundles_post_ra>
